<compile_context>
chip_gen: v5e
topology: v5e:2x2
jax: 0.10.0
libtpu: 0.0.40
codegen_flags: <defaults>
</compile_context>

<pallas_src>
import jax
import jax.numpy as jnp
from jax.experimental import pallas as pl
from jax.experimental.pallas import tpu as pltpu


def _round_up(x, m):
    return (x + m - 1) // m * m


# --------------------------------------------------------------------------- #
# Kernel: accumulate logits across K tiles directly in the (resident) output
# block; bias + numerically-stable softmax in the last-K finalize branch.
# --------------------------------------------------------------------------- #
def _logit_softmax_kernel(x_ref, w_ref, b_ref, o_ref):
    k = pl.program_id(1)

    # MXU partial product: bf16 x bf16 inputs, f32 accumulation.
    part = jnp.dot(
        x_ref[...].astype(jnp.bfloat16),
        w_ref[...],
        preferred_element_type=jnp.float32,
    )

    @pl.when(k == 0)
    def _init():
        o_ref[...] = part

    @pl.when(k > 0)
    def _accum():
        o_ref[...] += part

    @pl.when(k == pl.num_programs(1) - 1)
    def _finalize():
        # Bias added exactly once after the full K reduction.  Pad classes
        # carry bias = -1e30 -> exp == 0 -> softmax over real classes only.
        logits = o_ref[...] + b_ref[...]
        m = jnp.max(logits, axis=-1, keepdims=True)
        e = jnp.exp(logits - m)
        denom = jnp.sum(e, axis=-1, keepdims=True)
        o_ref[...] = e / denom  # exact divide: B*N elems, hidden under DMA


# --------------------------------------------------------------------------- #
# One-time weight preparation (hoisted out of the per-call path).
# --------------------------------------------------------------------------- #
def _pick_tk(D):
    d128 = _round_up(D, 128)
    return d128 if d128 <= 512 else 512


def prepare_classifier_params(w, b):
    """w: [D, N] f32, b: [N] f32 -> dict with padded bf16 W and padded f32 bias."""
    D, N = w.shape
    N_pad = _round_up(N, 128)
    TK = _pick_tk(D)
    D_pad = _round_up(_round_up(D, 128), TK)

    w_p = jnp.pad(w, ((0, D_pad - D), (0, N_pad - N))).astype(jnp.bfloat16)
    b_p = jnp.pad(
        b.astype(jnp.float32).reshape(1, N),
        ((0, 0), (0, N_pad - N)),
        constant_values=-1e30,
    )
    return {"w": w_p, "b": b_p, "D": D, "N": N, "D_pad": D_pad,
            "N_pad": N_pad, "TK": TK}


def _vmem_limit_bytes():
    try:
        cap = pltpu.get_tpu_info().vmem_capacity_bytes
    except Exception:
        cap = 64 * 1024 * 1024  # conservative fallback (fits v7x per-core VMEM)
    # ~3/4 of physical per-core VMEM, capped: ~48 MiB on v7x, 96 MiB on v5e/v6e.
    return int(min(cap * 3 // 4, 96 * 1024 * 1024))


# --------------------------------------------------------------------------- #
# Forward: x [B, C, H, W] f32 -> [B, N] class probabilities.
# --------------------------------------------------------------------------- #
def logit_to_ohe_forward(x_nchw, params):
    B = x_nchw.shape[0]
    D = 1
    for s in x_nchw.shape[1:]:
        D *= s
    assert D == params["D"], "input feature size does not match prepared W"

    D_pad, N_pad, N, TK = params["D_pad"], params["N_pad"], params["N"], params["TK"]
    vmem_limit = _vmem_limit_bytes()

    # ---- batch tile: up to 256 rows, multiple of 8 sublanes, VMEM-checked ----
    TB = min(256, _round_up(B, 8))

    def _tile_vmem(tb):  # double-buffered in/out estimate
        return (tb * TK * 4 * 2          # x tile (f32)
                + TK * N_pad * 2 * 2     # W tile (bf16)
                + tb * N_pad * 4 * 2     # output / accumulator (f32)
                + N_pad * 4 * 2)         # bias

    while TB > 8 and _tile_vmem(TB) > vmem_limit // 2:
        TB = max(8, (TB // 2) // 8 * 8)
    B_pad = _round_up(B, TB)

    # ---- x glue: flatten (torch .flatten(1)), zero-pad batch / reduction -----
    x_flat = x_nchw.reshape(B, D).astype(jnp.float32)
    if B_pad != B or D_pad != D:
        x_flat = jnp.pad(x_flat, ((0, B_pad - B), (0, D_pad - D)))

    grid = (B_pad // TB, D_pad // TK)
    n_batch_tiles = grid[0]

    out_padded = pl.pallas_call(
        _logit_softmax_kernel,
        out_shape=jax.ShapeDtypeStruct((B_pad, N_pad), jnp.float32),
        grid_spec=pltpu.PrefetchScalarGridSpec(
            num_scalar_prefetch=0,
            grid=grid,
            in_specs=[
                pl.BlockSpec((TB, TK), lambda i, k: (i, k)),      # x tile (f32)
                pl.BlockSpec((TK, N_pad), lambda i, k: (k, 0)),   # W tile (bf16)
                pl.BlockSpec((1, N_pad), lambda i, k: (0, 0)),    # bias (resident)
            ],
            out_specs=pl.BlockSpec((TB, N_pad), lambda i, k: (i, 0)),
        ),
        compiler_params=pltpu.CompilerParams(
            dimension_semantics=("parallel", "arbitrary"),
            vmem_limit_bytes=vmem_limit,
        ),
        cost_estimate=pl.CostEstimate(
            flops=2 * B_pad * D_pad * N_pad,
            transcendentals=B_pad * N_pad,
            bytes_accessed=int(
                B_pad * D_pad * 4                      # x (f32, read once)
                + n_batch_tiles * D_pad * N_pad * 2    # W re-streamed per batch tile
                + B_pad * N_pad * 4                    # output
                + N_pad * 4                            # bias
            ),
        ),
    )(x_flat, params["w"], params["b"])

    return out_padded[:B, :N]


if __name__ == "__main__":
    # Small shapes consistent with the module: NCHW input, 128 classes.
    B, C, H, W_DIM = 2, 4, 16, 16
    N_CLASSES = 128
    D = C * H * W_DIM

    key = jax.random.PRNGKey(0)
    kx, kw, kb = jax.random.split(key, 3)
    x = jax.random.normal(kx, (B, C, H, W_DIM), dtype=jnp.float32)
    # Deterministic synthetic "network" parameters (linear classifier).
    w = jax.random.normal(kw, (D, N_CLASSES), dtype=jnp.float32) * 0.02
    b = jax.random.normal(kb, (N_CLASSES,), dtype=jnp.float32) * 0.01

    # One-time weight prep (not in the per-call path).
    params = prepare_classifier_params(w, b)

    probs = jax.block_until_ready(logit_to_ohe_forward(x, params))

    # Reference check against plain JAX (same semantics as the torch module).
    logits_ref = x.reshape(B, D) @ w + b
    probs_ref = jax.nn.softmax(logits_ref, axis=1)
    assert probs.shape == (B, N_CLASSES)
    # bf16 MXU streaming -> slightly looser tolerance than pure f32.
    assert jnp.allclose(probs, probs_ref, atol=5e-3, rtol=5e-2)
    assert jnp.allclose(jnp.sum(probs, axis=1), 1.0, atol=1e-3)

    print("KERNEL_OK")
</pallas_src>

<mosaic_0001>
module attributes {stable_mosaic.version = 11 : i64} {
  func.func @_logit_softmax_kernel(%arg0: i32, %arg1: i32, %arg2: memref<8x512xf32, #tpu.memory_space<vmem>>, %arg3: memref<512x128xbf16, #tpu.memory_space<vmem>>, %arg4: memref<1x128xf32, #tpu.memory_space<vmem>>, %arg5: memref<8x128xf32, #tpu.memory_space<vmem>>) attributes {dimension_semantics = [#tpu.dimension_semantics<parallel>, #tpu.dimension_semantics<arbitrary>], iteration_bounds = array<i64: 1, 2>, scalar_prefetch = 0 : i64, scratch_operands = 0 : i64, tpu.core_type = #tpu.core_type<tc>, window_params = [{transform_indices = @transform_0, window_bounds = array<i64: 8, 512>}, {transform_indices = @transform_1, window_bounds = array<i64: 512, 128>}, {pipeline_mode = #tpu.pipeline_mode<synchronous>, transform_indices = @transform_2, window_bounds = array<i64: 1, 128>}, {transform_indices = @transform_3, window_bounds = array<i64: 8, 128>}]} {
    %c0 = arith.constant 0 : index
    %c0_0 = arith.constant 0 : index
    %0 = vector.load %arg2[%c0, %c0_0] : memref<8x512xf32, #tpu.memory_space<vmem>>, vector<8x512xf32>
    %1 = arith.truncf %0 : vector<8x512xf32> to vector<8x512xbf16>
    %c0_1 = arith.constant 0 : index
    %c0_2 = arith.constant 0 : index
    %2 = vector.load %arg3[%c0_1, %c0_2] : memref<512x128xbf16, #tpu.memory_space<vmem>>, vector<512x128xbf16>
    %cst = arith.constant dense<0.000000e+00> : vector<8x128xf32>
    %3 = tpu.matmul %1, %2, %cst {dimension_numbers = #tpu.dot_dimension_numbers<[1], [0], [0], [1], [0, 0, 1, 1], [], []>} : vector<8x512xbf16>, vector<512x128xbf16>, vector<8x128xf32> -> vector<8x128xf32>
    %c0_i32 = arith.constant 0 : i32
    %4 = arith.cmpi eq, %arg1, %c0_i32 : i32
    %5 = arith.extui %4 : i1 to i32
    %c0_i32_3 = arith.constant 0 : i32
    %6 = arith.cmpi ne, %5, %c0_i32_3 : i32
    scf.if %6 {
      %c0_7 = arith.constant 0 : index
      %c0_8 = arith.constant 0 : index
      %13 = vector.load %arg5[%c0_7, %c0_8] : memref<8x128xf32, #tpu.memory_space<vmem>>, vector<8x128xf32>
      tpu.vector_store %arg5[%c0_7, %c0_8], %3 {strides = array<i32>} : memref<8x128xf32, #tpu.memory_space<vmem>>, vector<8x128xf32>,
    } else {
    }
    %c0_i32_4 = arith.constant 0 : i32
    %7 = arith.cmpi sgt, %arg1, %c0_i32_4 : i32
    %8 = arith.extui %7 : i1 to i32
    %c0_i32_5 = arith.constant 0 : i32
    %9 = arith.cmpi ne, %8, %c0_i32_5 : i32
    scf.if %9 {
      %c0_7 = arith.constant 0 : index
      %c0_8 = arith.constant 0 : index
      %13 = vector.load %arg5[%c0_7, %c0_8] : memref<8x128xf32, #tpu.memory_space<vmem>>, vector<8x128xf32>
      %14 = arith.addf %13, %3 : vector<8x128xf32>
      %c0_9 = arith.constant 0 : index
      %c0_10 = arith.constant 0 : index
      %15 = vector.load %arg5[%c0_9, %c0_10] : memref<8x128xf32, #tpu.memory_space<vmem>>, vector<8x128xf32>
      tpu.vector_store %arg5[%c0_9, %c0_10], %14 {strides = array<i32>} : memref<8x128xf32, #tpu.memory_space<vmem>>, vector<8x128xf32>,
    } else {
    }
    %c1_i32 = arith.constant 1 : i32
    %10 = arith.cmpi eq, %arg1, %c1_i32 : i32
    %11 = arith.extui %10 : i1 to i32
    %c0_i32_6 = arith.constant 0 : i32
    %12 = arith.cmpi ne, %11, %c0_i32_6 : i32
    scf.if %12 {
      %c0_7 = arith.constant 0 : index
      %c0_8 = arith.constant 0 : index
      %13 = vector.load %arg5[%c0_7, %c0_8] : memref<8x128xf32, #tpu.memory_space<vmem>>, vector<8x128xf32>
      %c0_9 = arith.constant 0 : index
      %c0_10 = arith.constant 0 : index
      %14 = vector.load %arg4[%c0_9, %c0_10] : memref<1x128xf32, #tpu.memory_space<vmem>>, vector<1x128xf32>
      %15 = vector.broadcast %14 : vector<1x128xf32> to vector<8x128xf32>
      %16 = arith.addf %13, %15 : vector<8x128xf32>
      %cst_11 = arith.constant dense<0xFF800000> : vector<8xf32>
      %17 = vector.multi_reduction <maximumf>, %16, %cst_11 [1] : vector<8x128xf32> to vector<8xf32>
      %18 = vector.shape_cast %17 : vector<8xf32> to vector<8x1xf32>
      %19 = vector.broadcast %18 : vector<8x1xf32> to vector<8x128xf32>
      %20 = arith.subf %16, %19 : vector<8x128xf32>
      %21 = math.exp %20 : vector<8x128xf32>
      %cst_12 = arith.constant dense<0.000000e+00> : vector<8xf32>
      %22 = vector.multi_reduction <add>, %21, %cst_12 [1] : vector<8x128xf32> to vector<8xf32>
      %23 = vector.shape_cast %22 : vector<8xf32> to vector<8x1xf32>
      %24 = vector.broadcast %23 : vector<8x1xf32> to vector<8x128xf32>
      %25 = arith.divf %21, %24 : vector<8x128xf32>
      %c0_13 = arith.constant 0 : index
      %c0_14 = arith.constant 0 : index
      %26 = vector.load %arg5[%c0_13, %c0_14] : memref<8x128xf32, #tpu.memory_space<vmem>>, vector<8x128xf32>
      tpu.vector_store %arg5[%c0_13, %c0_14], %25 {strides = array<i32>} : memref<8x128xf32, #tpu.memory_space<vmem>>, vector<8x128xf32>,
    } else {
    }
    return
  }
  func.func @transform_0(%arg0: i32, %arg1: i32) -> (i32, i32) {
    %c0_i32 = arith.constant 0 : i32
    return %arg0, %arg1 : i32, i32
  }
  func.func @transform_1(%arg0: i32, %arg1: i32) -> (i32, i32) {
    %c0_i32 = arith.constant 0 : i32
    %c0_i32_0 = arith.constant 0 : i32
    return %arg1, %c0_i32 : i32, i32
  }
  func.func @transform_2(%arg0: i32, %arg1: i32) -> (i32, i32) {
    %c0_i32 = arith.constant 0 : i32
    %c0_i32_0 = arith.constant 0 : i32
    %c0_i32_1 = arith.constant 0 : i32
    return %c0_i32, %c0_i32_0 : i32, i32
  }
  func.func @transform_3(%arg0: i32, %arg1: i32) -> (i32, i32) {
    %c0_i32 = arith.constant 0 : i32
    %c0_i32_0 = arith.constant 0 : i32
    return %arg0, %c0_i32 : i32, i32
  }
}

</mosaic_0001>

<bundles_post_ra>
// kernel: tpu_custom_call.1
= control target key start
LH: loop header
LB: loop body
LE: loop exit
PB: predicated region body
PF: predicated region fallthrough
CT: control target
= control target key end

     0   :  { %8 = vsyncpa [#allocation3], 0  ;;  %s1285_s0 = inlined_call_operand.hbm [shape: f32[8,1024], index: 0, kind: input, shape index: {}]   ;;  %s1286_s1 = inlined_call_operand.hbm [shape: bf16[1024,128], index: 1, kind: input, shape index: {}]   ;;  %s1287_s2 = inlined_call_operand.vmem [shape: f32[1,128], index: 2, kind: input, shape index: {}]   ;;  %s1288_s3 = inlined_call_operand.hbm [shape: f32[8,128], index: 3, kind: output, shape index: {}]  }
   0x1   :  { %10 = vsyncpa [#allocation3 + $0x1], 0 }
   0x2   :  { %11 = vsyncpa [#allocation6], 0 }
   0x3   :  { %13 = vsyncpa [#allocation6 + $0x1], 0 }
   0x4   :  { %14 = vsyncpa [#allocation4], 0  ;;  %s1127_s12 = smov 0   ;;  %s1129_s13 = smov 0  }
   0x5   :  { %s1131_s14 = smov 0   ;;  %s1133_s15 = smov 0  }
   0x6   :  { %s1135_s16 = smov 0   ;;  %s1137_s17 = smov 0  }
   0x7 LB: > { %s701_s18 = sadd.s32 4294967295, %s1102_s17   ;;  %s29_s19 = sadd.s32 1, %s1098_s16  ;;  %s1102_s17 = sphi %s1137_s17, %s20_s17   ;;  %s1098_s16 = sphi %s1135_s16, %s1296_s16   ;;  %s1094_s15 = sphi %s1133_s15, %s1295_s15   ;;  %s1090_s14 = sphi %s1131_s14, %s1294_s14   ;;  %s1086_s13 = sphi %s1129_s13, %s1293_s13   ;;  %s1082_s12 = sphi %s1127_s12, %s1292_s12  }
   0x8   : > { %p30_p0 = scmp.ge.s32.totalorder %s29_s19, 2  ;;  %s41_s20 = sadd.s32 1, %s1090_s14 }
   0x9   : > { %p48_p1 = scmp.ne.s32.totalorder %s1090_s14, %s1086_s13  ;;  %p49_p2 = scmp.eq.s32.totalorder %s1102_s17, 0 }
   0xa   : > { %s1298_s19 = smov (%p30_p0, %s29_s19), 0  ;;  %p54_p4 = scmp.ne.s32.totalorder %s1086_s13, %s1082_s12 }
   0xb   : > { %p1163_p3 = por %p49_p2, %p48_p1  ;;  %s37_s22 = ssub.s32 %s1098_s16, %s1298_s19 }
   0xc   : > { %p55_p5 = scmp.eq.s32.totalorder %s701_s18, 0  ;;  %p39_p6 = scmp.eq.s32.totalorder %s37_s22, 0 }
   0xd   : > { %p897_p8 = scmp.lt.s32.totalorder %s1102_s17, 2  ;;  %s1181_s25 = sand.u32 1, %s1090_s14  }
   0xe   : > { %p1172_p7 = por %p55_p5, %p54_p4  ;;  %s848_s26 = sshll.u32 %s1098_s16, 5 }
   0xf   : > { %s1178_s24 = scalar_select %p39_p6, %s1090_s14, %s41_s20  }
  0x10   : > { %s704_s27 = sshll.u32 %s1181_s25, 5  ;;  %s165_s30 = scalar_lea.hbm %s1285_s0, %s848_s26 }
  0x11   : > { %s167_s4 = sshll.u32 %s165_s30, 4  ;;  %s158_s5 = scalar_lea.vmem [#allocation2], %s704_s27  ;;  %s168_s4 = int_to_ptr.hbm [resolvable:$true] %s167_s4 }
  0x12   : > { %s169_s6 = sshll.u32 %s158_s5, 4  ;;  %p1190_p9 = pnand %p897_p8, %p1163_p3  ;;  %s170_s6 = int_to_ptr.vmem [resolvable:$true] %s169_s6 }
  0x13   : > { %p710_p10 = scmp.ge.s32.totalorder %s1102_s17, 1  ;;  %p196_p11 = scmp.lt.s32.totalorder %s1102_s17, 3 }
  0x14   : > { %s707_s8 = sshll.u32 %s1181_s25, 8  ;;  %s155_s9 = scalar_lea.sflag [#allocation3], %s1181_s25 }
  0x15   : > { %893 = dma.hbm_to_vmem [thread:$0]  (!%p1190_p9), %s168_s4, 512, %s170_s6, %s155_s9  }
  0x16   : > { %p197_p12 = pnand %p710_p10, %p196_p11  ;;  %s849_s10 = sshll.u32 %s1098_s16, 8 }
  0x17   : > { %s180_s11 = scalar_lea.vmem [#allocation5], %s707_s8  ;;  %s185_s21 = scalar_lea.hbm %s1286_s1, %s849_s10 }
  0x18   : > { %s188_s12 = sshll.u32 %s180_s11, 4  ;;  %s186_s26 = sshll.u32 %s185_s21, 4  ;;  %s189_s12 = int_to_ptr.vmem [resolvable:$true] %s188_s12  ;;  %s187_s26 = int_to_ptr.hbm [resolvable:$true] %s186_s26 }
  0x19   : > { %s177_s27 = scalar_lea.sflag [#allocation6], %s1181_s25  ;;  %s1104_s28 = smov 64  }
  0x1a   : > { %s1105_s29 = smov 4   ;;  %200 = sbr.rel (%p197_p12) target bundleno = 502 (0x1f6), region = 32 }
  0x1b   : > { %896 = dma.hbm_to_vmem [thread:$0]  (!%p1190_p9), %s187_s26, 4096, %s189_s12, %s177_s27, %s1104_s28, %s1104_s28, %s1105_s29  }
  0x1c   : > { %s202_s30 = sand.u32 (!%p197_p12), 1, %s1086_s13  }
  0x1d   : > { %s711_s4 = sshll.u32 (!%p197_p12), %s202_s30, 5  ;;  %s203_s5 = scalar_lea.sflag (!%p197_p12), [#allocation3], %s202_s30 }
  0x1e   : > { %s1208_s6 = scalar_lea.vmem (!%p197_p12), [#allocation2], %s711_s4 }
  0x1f   : > { %1069 = dma.done.wait (%p1172_p7), %s203_s5, 512  }
  0x20   : > { %1071 = vsyncadd (%p1172_p7), %s203_s5, 4294966784  ;;  %s712_s8 = sshll.u32 %s202_s30, 8  ;;  %s213_s25 = scalar_lea.sflag [#allocation6], %s202_s30 }
  0x21   : > { %s1214_s9 = scalar_lea.vmem [#allocation5], %s712_s8 }
  0x22   : > { %1073 = dma.done.wait (%p1172_p7), %s213_s25, 4096  }
  0x23   : > { %1075 = vsyncadd (%p1172_p7), %s213_s25, 4294963200  ;;  %v857_v0 = vld [vmem:[%s1214_s9 + $0x38] sm:$0xff]  ;;  %v856_v4 = vld [vmem:[%s1214_s9 + $0x30] sm:$0xff]  ;;  %p841_p13 = scmp.ne.s32.totalorder %s1094_s15, 0 }
  0x24   : > { %v865_v1 = vld [vmem:[%s1214_s9 + $0x78] sm:$0xff]  ;;  %506 = vmatpush.bf16.msra.mxu0 %v857_v0  ;;  %v864_v5 = vld [vmem:[%s1214_s9 + $0x70] sm:$0xff]  ;;  %v855_v8 = vld [vmem:[%s1214_s9 + $0x28] sm:$0xff] }
  0x25   : > { %v873_v2 = vld [vmem:[%s1214_s9 + $0xb8] sm:$0xff]  ;;  %519 = vmatpush.bf16.msra.mxu1 %v865_v1  ;;  %v872_v6 = vld [vmem:[%s1214_s9 + $0xb0] sm:$0xff]  ;;  %v863_v9 = vld [vmem:[%s1214_s9 + $0x68] sm:$0xff] }
  0x26   : > { %v881_v3 = vld [vmem:[%s1214_s9 + $0xf8] sm:$0xff]  ;;  %532 = vmatpush.bf16.msra.mxu2 %v873_v2  ;;  %v880_v7 = vld [vmem:[%s1214_s9 + $0xf0] sm:$0xff]  ;;  %v871_v10 = vld [vmem:[%s1214_s9 + $0xa8] sm:$0xff] }
  0x27   : > { %545 = vmatpush.bf16.msra.mxu3 %v881_v3  ;;  %v879_v11 = vld [vmem:[%s1214_s9 + $0xe8] sm:$0xff]  ;;  %v854_v12 = vld [vmem:[%s1214_s9 + $0x20] sm:$0xff]  ;;  %v853_v16 = vld [vmem:[%s1214_s9 + $0x18] sm:$0xff] }
  0x28   : > { %507 = vmatpush.bf16.msra.mxu0 %v856_v4  ;;  %v862_v13 = vld [vmem:[%s1214_s9 + $0x60] sm:$0xff]  ;;  %v861_v17 = vld [vmem:[%s1214_s9 + $0x58] sm:$0xff]  ;;  %v852_v20 = vld [vmem:[%s1214_s9 + $0x10] sm:$0xff] }
  0x29   : > { %520 = vmatpush.bf16.msra.mxu1 %v864_v5  ;;  %v870_v14 = vld [vmem:[%s1214_s9 + $0xa0] sm:$0xff]  ;;  %v869_v18 = vld [vmem:[%s1214_s9 + $0x98] sm:$0xff]  ;;  %v860_v21 = vld [vmem:[%s1214_s9 + $0x50] sm:$0xff] }
  0x2a   : > { %533 = vmatpush.bf16.msra.mxu2 %v872_v6  ;;  %v878_v15 = vld [vmem:[%s1214_s9 + $0xe0] sm:$0xff]  ;;  %v877_v19 = vld [vmem:[%s1214_s9 + $0xd8] sm:$0xff]  ;;  %v868_v22 = vld [vmem:[%s1214_s9 + $0x90] sm:$0xff] }
  0x2b   : > { %546 = vmatpush.bf16.msra.mxu3 %v880_v7  ;;  %v876_v23 = vld [vmem:[%s1214_s9 + $0xd0] sm:$0xff]  ;;  %v851_v24 = vld [vmem:[%s1214_s9 + $0x8] sm:$0xff]  ;;  %v850_v28 = vld [vmem:[%s1214_s9] sm:$0xff] }
  0x2c   : > { %508 = vmatpush.bf16.msra.mxu0 %v855_v8  ;;  %v859_v25 = vld [vmem:[%s1214_s9 + $0x48] sm:$0xff]  ;;  %v858_v29 = vld [vmem:[%s1214_s9 + $0x40] sm:$0xff]  ;;  %v244_v34 = vld [vmem:[%s1208_s6 + $0x10] sm:$0xff] }
  0x2d   : > { %521 = vmatpush.bf16.msra.mxu1 %v863_v9  ;;  %v867_v26 = vld [vmem:[%s1214_s9 + $0x88] sm:$0xff]  ;;  %v866_v30 = vld [vmem:[%s1214_s9 + $0x80] sm:$0xff]  ;;  %v245_v35 = vld [vmem:[%s1208_s6 + $0x18] sm:$0xff]  ;;  %v248_v38 = vpack.c.bf16 %v244_v34, %v244_v34 }
  0x2e   : > { %534 = vmatpush.bf16.msra.mxu2 %v871_v10  ;;  %v875_v27 = vld [vmem:[%s1214_s9 + $0xc8] sm:$0xff]  ;;  %v242_v31 = vld [vmem:[%s1208_s6] sm:$0xff]  ;;  %v249_v39 = vpack.c.bf16 %v245_v35, %v245_v35 }
  0x2f   : > { %547 = vmatpush.bf16.msra.mxu3 %v879_v11  ;;  %v243_v32 = vld [vmem:[%s1208_s6 + $0x8] sm:$0xff]  ;;  %v874_v33 = vld [vmem:[%s1214_s9 + $0xc0] sm:$0xff]  ;;  %v246_v36 = vpack.c.bf16 %v242_v31, %v242_v31 }
  0x30   : > { %509 = vmatpush.bf16.msra.mxu0 %v854_v12  ;;  %v247_v37 = vpack.c.bf16 %v243_v32, %v243_v32 }
  0x31   : > { %522 = vmatpush.bf16.msra.mxu1 %v862_v13 }
  0x32   : > { %535 = vmatpush.bf16.msra.mxu2 %v870_v14 }
  0x33   : > { %548 = vmatpush.bf16.msra.mxu3 %v878_v15 }
  0x34   : > { %510 = vmatpush.bf16.msra.mxu0 %v853_v16 }
  0x35   : > { %523 = vmatpush.bf16.msra.mxu1 %v861_v17 }
  0x36   : > { %536 = vmatpush.bf16.msra.mxu2 %v869_v18 }
  0x37   : > { %549 = vmatpush.bf16.msra.mxu3 %v877_v19 }
  0x38   : > { %511 = vmatpush.bf16.msra.mxu0 %v852_v20 }
  0x39   : > { %524 = vmatpush.bf16.msra.mxu1 %v860_v21 }
  0x3a   : > { %537 = vmatpush.bf16.msra.mxu2 %v868_v22 }
  0x3b   : > { %550 = vmatpush.bf16.msra.mxu3 %v876_v23 }
  0x3c   : > { %512 = vmatpush.bf16.msra.mxu0 %v851_v24 }
  0x3d   : > { %525 = vmatpush.bf16.msra.mxu1 %v859_v25 }
  0x3e   : > { %538 = vmatpush.bf16.msra.mxu2 %v867_v26 }
  0x3f   : > { %551 = vmatpush.bf16.msra.mxu3 %v875_v27 }
  0x40   : > { %513 = vmatpush.bf16.msra.mxu0 %v850_v28 }
  0x41   : > { %526 = vmatpush.bf16.msra.mxu1 %v858_v29 }
  0x42   : > { %539 = vmatpush.bf16.msra.mxu2 %v866_v30 }
  0x43   : > { %552 = vmatpush.bf16.msra.mxu3 %v874_v33  ;;  %514 = vmatmul.bf16.vlgmr.msra.gmra.mxu0 %v246_v36 }
  0x44   : > { %527 = vmatmul.bf16.vlgmr.msra.gmra.mxu1 %v247_v37 }
  0x45   : > { %540 = vmatmul.bf16.vlgmr.msra.gmra.mxu2 %v248_v38 }
  0x46   : > { %553 = vmatmul.bf16.vlgmr.msra.gmra.mxu3 %v249_v39 }
  0xc0   : > { %v515_v40 = vpop.f32.mrf.mxu0 }
  0xc1   : > { %v528_v41 = vpop.f32.mrf.mxu1 }
  0xc2   : > { %v529_v42 = vadd.f32 %v528_v41, %v515_v40 }
  0xc8   : > { %v541_v43 = vpop.f32.mrf.mxu2  ;;  %v517_v46 = vpop.f32.mrf.mxu0 }
  0xc9   : > { %v554_v44 = vpop.f32.mrf.mxu3  ;;  %v542_v45 = vadd.f32 %v541_v43, %v529_v42  ;;  %v530_v47 = vpop.f32.mrf.mxu1 }
  0xcb   : > { %v555_v48 = vadd.f32 %v554_v44, %v542_v45 }
  0xcd   : > { %561 = sbr.rel (%p841_p13) target bundleno = 211 (0xd3), region = 44 }
  0xd0   : > { %v543_v49 = vpop.f32.mrf.mxu2 }
  0xd1   : > { %v556_v50 = vpop.f32.mrf.mxu3 }
  0xd2   : > { %562 = vst [vmem:[#allocation7] sm:$0xff] %v555_v48 }
  0xd3 PF: > { %p842_p0 = scmp.le.s32.totalorder %s1094_s15, 0 }
  0xd5   : > { %566 = sbr.rel (%p842_p0) target bundleno = 222 (0xde), region = 48 }
  0xda   : > { %v567_v51 = vld [vmem:[#allocation7] sm:$0xff] }
  0xdb   : > { %v568_v52 = vadd.f32 %v567_v51, %v555_v48 }
  0xdd   : > { %569 = vst [vmem:[#allocation7] sm:$0xff] %v568_v52 }
  0xde PF: > { %p843_p1 = scmp.ne.s32.totalorder %s1094_s15, 1 }
  0xe0   : > { %573 = sbr.rel (%p843_p1) target bundleno = 496 (0x1f0), region = 52 }
  0xe5   : > { %v574_v53 = vld [vmem:[#allocation7] sm:$0xff] }
  0xe6   : > { %v951_v54 = vld [vmem:[%s1287_s2] ss:$0 sm:$0xff] }
  0xe7   : > { %v579_v55 = vadd.f32 %v951_v54, %v574_v53 }
  0xe9   : > { %580 = vmax.xlane.f32.xlu0 %v579_v55 }
 0x15c   : > { %v581_v56 = vpop.xlane.xlu0 %580 }
 0x15d   : > { %v582_v57 = vsub.f32 %v579_v55, %v581_v56 }
 0x15f   : > { %v583_v58 = vmul.f32 1.442695, %v582_v57 }
 0x161   : > { %952 = vpow2.f32 %v583_v58 }
 0x167   : > { %v953_v59 = vpop.eup %952 }
 0x168   : > { %585 = vadd.xlane.f32.xlu0 %v953_v59 }
 0x1db   : > { %v586_v60 = vpop.xlane.xlu0 %585 }
 0x1dc   : > { %954 = vrcp.f32 %v586_v60  ;;  %v598_v0 = vand.u32 2147483648, %v586_v60  ;;  %v596_v2 = vand.u32 2147483647, %v586_v60  ;;  %vm592_vm1 = vweird.f32 %v586_v60 }
 0x1de   : > { %v599_v4 = vor.u32 1.1754944e-38, %v598_v0  ;;  %vm597_vm3 = vcmp.eq.f32.partialorder %v596_v2, 8.507059e+37 }
 0x1e2   : > { %v955_v61 = vpop.eup %954 }
 0x1e3   : > { %v588_v62 = vmul.f32 %v955_v61, %v586_v60  ;;  %vm593_vm0 = vweird.f32 %v955_v61 }
 0x1e4   : > { %vm594_vm2 = vmor %vm592_vm1, %vm593_vm0 }
 0x1e5   : > { %v589_v63 = vsub.f32 1.0, %v588_v62 }
 0x1e7   : > { %v590_v1 = vmul.f32 %v955_v61, %v589_v63 }
 0x1e9   : > { %v591_v3 = vadd.f32 %v955_v61, %v590_v1 }
 0x1eb   : > { %v595_v5 = vsel %vm594_vm2, %v955_v61, %v591_v3 }
 0x1ec   : > { %v600_v6 = vsel %vm597_vm3, %v599_v4, %v595_v5 }
 0x1ed   : > { %v601_v7 = vmul.f32 %v953_v59, %v600_v6 }
 0x1ef   : > { %602 = vst [vmem:[#allocation7] sm:$0xff] %v601_v7 }
 0x1f0 PF: > { %p898_p2 = scmp.eq.s32.totalorder %s701_s18, 1  ;;  %s613_s11 = sshll.u32 %s1288_s3, 4  ;;  %s614_s11 = int_to_ptr.hbm [resolvable:$true] %s613_s11 }
 0x1f1   : > { %s1106_s12 = smov [#allocation7]  }
 0x1f2   : > { %s611_s20 = sshll.u32 %s1106_s12, 4  ;;  %s612_s20 = int_to_ptr.vmem [resolvable:$true] %s611_s20 }
 0x1f3   : > { %887 = dma.vmem_to_hbm [thread:$0]  (%p898_p2), %s612_s20, 128, %s614_s11, [#allocation4]  }
 0x1f4   : > { %1077 = dma.done.wait (%p898_p2), [#allocation4], 128  }
 0x1f5   : > { %1079 = vsyncadd (%p898_p2), [#allocation4], 4294967168 }
 0x1f6 PF: > { %s20_s17 = sadd.s32 1, %s1102_s17   ;;  %s1292_s12 = smov %s1086_s13 }
 0x1f7   : > { %p17_p3 = scmp.ge.s32.totalorder %s20_s17, 4   ;;  %s1293_s13 = smov %s1090_s14 }
 0x1f8   : > { %s1294_s14 = smov %s1178_s24  ;;  %s1295_s15 = smov %s1098_s16 }
 0x1f9   : > { %s1296_s16 = smov %s1298_s19  ;;  %19 = sbr.rel (!%p17_p3) target bundleno = 7 (0x7), region = 95 }
 0x1fe   :  { %627 = vsyncpa [#allocation3], 1 }
 0x1ff   :  { %629 = vsyncpa [#allocation3 + $0x1], 1 }
 0x200   :  { %630 = vsyncpa [#allocation6], 1 }
 0x201   :  { %632 = vsyncpa [#allocation6 + $0x1], 1 }
 0x202   :  { %633 = vsyncpa [#allocation4], 1 }
 0x203   :  { %635 = vsyncpa [#allocation4 + $0x1], 1 }

</bundles_post_ra>
